<compile_context>
chip_gen: v5e
topology: v5e:2x2
jax: 0.10.0
libtpu: 0.0.40
codegen_flags: <defaults>
</compile_context>

<pallas_src>
import jax
import jax.numpy as jnp
from jax.experimental import pallas as pl
from jax.experimental.pallas import tpu as pltpu

LEAKY_RATE = 0.1
_LANE = 128


def _cdiv(a, b):
    return -(-a // b)


def _round_up(a, m):
    return _cdiv(a, m) * m


def _vmem_budget():
    """Returns (tile_budget_bytes, vmem_limit_bytes), generation-aware."""
    cap = 64 << 20  # conservative default: v7x per-TensorCore VMEM
    try:
        info = pltpu.get_tpu_info()
        cap = int(getattr(info, "vmem_capacity_bytes", cap)) or cap
    except Exception:
        pass
    # ~48 MiB scoped limit on v7x (64 MiB VMEM), ~96 MiB on v5e/v6e (128 MiB).
    limit = min((cap * 3) // 4, 96 << 20)
    # Half of the limit for the double-buffered in+out tiles; the rest is
    # headroom for the resident weight/bias and compiler scratch.
    return limit // 2, limit


def _pick_tiles(B, C_in, C_out, N, itemsize, *, vmem_budget,
                target_bytes=6 << 20, tn_max=32768):
    """Pick (nb, tn): batch rows folded per block, lane-axis tile width."""
    target = min(target_bytes, vmem_budget)
    # Double-buffered input + output tile bytes per column, per batch row.
    per_col = 2 * (C_in + C_out) * itemsize
    row_bytes = per_col * max(N, 1)

    if row_bytes >= target or B == 1:
        # Large N (or single batch): nb = 1, balanced 128-multiple lane tiles.
        nb = 1
        tn_cap = min(tn_max, max(_LANE, (vmem_budget // per_col) // _LANE * _LANE))
        if N <= tn_cap:
            tn = N
        else:
            # Balanced tiling: avoids a nearly-empty trailing block.
            tn = _round_up(_cdiv(N, _cdiv(N, tn_cap)), _LANE)
        # v7x megacore: guarantee >= 2 programs when B == 1.
        if B == 1 and _cdiv(N, tn) < 2 and N >= 2 * _LANE:
            tn = _round_up(_cdiv(N, 2), _LANE)
        return nb, tn

    # Small N, B > 1: keep full N on the lane axis and fold batch rows so each
    # grid step moves ~target bytes (amortizes per-step overhead / short DMAs).
    nb = max(1, min(B, target // row_bytes))
    if _cdiv(B, nb) < 2:  # keep >= 2 programs so v7x can split work
        nb = _cdiv(B, 2)
    return nb, N


def _conv1d_leaky_kernel(x_ref, w_ref, b_ref, o_ref):
    # x_ref: (nb, C_in, tn)   NCW-native slab, N on the lane axis
    # w_ref: (C_out, C_in)    resident weight (dtype matches x)
    # b_ref: (C_out, 1)       f32 bias column, broadcasts over lanes
    # o_ref: (nb, C_out, tn)  lane-dense output
    w = w_ref[...]
    b = b_ref[...]
    nb = x_ref.shape[0]

    def _one(i):
        acc = jnp.dot(w, x_ref[i], preferred_element_type=jnp.float32) + b
        # LeakyReLU(0.1); epilogue kept in f32, cast once on store.
        o_ref[i] = jnp.where(acc >= 0.0, acc, LEAKY_RATE * acc).astype(o_ref.dtype)

    if nb <= 8:
        for i in range(nb):          # short static trip count: unroll
            _one(i)
    else:
        pl.loop(0, nb)(_one)         # folded-batch blocks: rolled loop


def conv1d_forward(x, weight, bias, *, tn=None, nb=None):
    """Forward of Conv1d(k=1, stride=1, padding=0, bn=False) + LeakyReLU(0.1).

    x:      (B, C_in, N)      PyTorch NCW layout, consumed directly (f32 or bf16)
    weight: (C_out, C_in) or (C_out, C_in, 1)
    bias:   (C_out,)
    returns (B, C_out, N) in x.dtype
    """
    if weight.ndim == 3:  # nn.Conv1d weight with the k=1 axis still present
        weight = weight.reshape(weight.shape[0], weight.shape[1])

    B, C_in, N = x.shape
    C_out = weight.shape[0]

    tile_budget, vmem_limit = _vmem_budget()
    auto_nb, auto_tn = _pick_tiles(B, C_in, C_out, N, x.dtype.itemsize,
                                   vmem_budget=tile_budget)
    nb = auto_nb if nb is None else nb
    tn = auto_tn if tn is None else tn

    # Match weight dtype to x (bf16 x => bf16 MXU inputs, f32 accumulate);
    # bias stays f32 for the epilogue. No wrapper-side recast of x.
    w = weight.astype(x.dtype)
    b2 = bias.astype(jnp.float32).reshape(C_out, 1)

    grid = (pl.cdiv(B, nb), pl.cdiv(N, tn))

    cost = pl.CostEstimate(
        flops=2 * B * N * C_in * C_out,
        transcendentals=0,
        bytes_accessed=(x.dtype.itemsize * B * N * (C_in + C_out)
                        + w.dtype.itemsize * C_in * C_out
                        + b2.dtype.itemsize * C_out),
    )

    # TODO(synk): kernel_size > 1 / stride / padding are not implemented (the
    # pointconv module only ever uses the k=1 default).
    return pl.pallas_call(
        _conv1d_leaky_kernel,
        out_shape=jax.ShapeDtypeStruct((B, C_out, N), x.dtype),
        grid_spec=pltpu.PrefetchScalarGridSpec(
            num_scalar_prefetch=0,
            grid=grid,
            in_specs=[
                pl.BlockSpec((nb, C_in, tn), lambda b, i: (b, 0, i)),
                pl.BlockSpec((C_out, C_in), lambda b, i: (0, 0)),
                pl.BlockSpec((C_out, 1), lambda b, i: (0, 0)),
            ],
            out_specs=pl.BlockSpec((nb, C_out, tn), lambda b, i: (b, 0, i)),
        ),
        compiler_params=pltpu.CompilerParams(
            dimension_semantics=("parallel", "parallel"),
            vmem_limit_bytes=vmem_limit),
        cost_estimate=cost,
    )(x, w, b2)


def _reference(x, weight, bias):
    y = jnp.einsum("oc,bcn->bon", weight, x.astype(jnp.float32)) + bias[None, :, None]
    return jnp.where(y >= 0, y, LEAKY_RATE * y)


if __name__ == "__main__":
    key = jax.random.PRNGKey(0)
    k_x, k_w, k_b, k_x2 = jax.random.split(key, 4)

    # Shapes consistent with the module: Conv1d(8 -> 16, k=1) over (B, C_in, N).
    B, C_in, C_out, N = 2, 8, 16, 256
    x = jax.random.normal(k_x, (B, C_in, N), dtype=jnp.float32)
    weight = jax.random.normal(k_w, (C_out, C_in), dtype=jnp.float32) * 0.1
    bias = jax.random.normal(k_b, (C_out,), dtype=jnp.float32) * 0.1

    out = jax.block_until_ready(conv1d_forward(x, weight, bias))
    ref = _reference(x, weight, bias)
    assert out.shape == (B, C_out, N)
    assert jnp.allclose(out, ref, atol=1e-5, rtol=1e-5)

    # Ragged-N path with forced lane tiling (tail block boundary-masked).
    N2 = 800
    x2 = jax.random.normal(k_x2, (1, C_in, N2), dtype=jnp.float32)
    out2 = jax.block_until_ready(conv1d_forward(x2, weight, bias, tn=256, nb=1))
    assert out2.shape == (1, C_out, N2)
    assert jnp.allclose(out2, _reference(x2, weight, bias), atol=1e-5, rtol=1e-5)

    # bf16 I/O path: bf16 in HBM both ways, f32 accumulate + epilogue in-kernel.
    xb = x.astype(jnp.bfloat16)
    outb = jax.block_until_ready(conv1d_forward(xb, weight, bias))
    assert outb.dtype == jnp.bfloat16
    assert jnp.allclose(outb.astype(jnp.float32), ref, atol=5e-2, rtol=5e-2)

    print("KERNEL_OK")
</pallas_src>

<mosaic_0001>
module attributes {stable_mosaic.version = 11 : i64} {
  func.func @_conv1d_leaky_kernel(%arg0: i32, %arg1: i32, %arg2: memref<1x8x256xf32, #tpu.memory_space<vmem>>, %arg3: memref<16x8xf32, #tpu.memory_space<vmem>>, %arg4: memref<16x1xf32, #tpu.memory_space<vmem>>, %arg5: memref<1x16x256xf32, #tpu.memory_space<vmem>>) attributes {dimension_semantics = [#tpu.dimension_semantics<parallel>, #tpu.dimension_semantics<parallel>], iteration_bounds = array<i64: 2, 1>, scalar_prefetch = 0 : i64, scratch_operands = 0 : i64, tpu.core_type = #tpu.core_type<tc>, window_params = [{transform_indices = @transform_0, window_bounds = array<i64: 1, 8, 256>}, {pipeline_mode = #tpu.pipeline_mode<synchronous>, transform_indices = @transform_1, window_bounds = array<i64: 16, 8>}, {pipeline_mode = #tpu.pipeline_mode<synchronous>, transform_indices = @transform_2, window_bounds = array<i64: 16, 1>}, {transform_indices = @transform_3, window_bounds = array<i64: 1, 16, 256>}]} {
    %c0 = arith.constant 0 : index
    %c0_0 = arith.constant 0 : index
    %0 = vector.load %arg3[%c0, %c0_0] : memref<16x8xf32, #tpu.memory_space<vmem>>, vector<16x8xf32>
    %c0_1 = arith.constant 0 : index
    %c0_2 = arith.constant 0 : index
    %1 = vector.load %arg4[%c0_1, %c0_2] : memref<16x1xf32, #tpu.memory_space<vmem>>, vector<16x1xf32>
    %c0_3 = arith.constant 0 : index
    %c0_4 = arith.constant 0 : index
    %c0_5 = arith.constant 0 : index
    %2 = vector.load %arg2[%c0_3, %c0_4, %c0_5] : memref<1x8x256xf32, #tpu.memory_space<vmem>>, vector<1x8x256xf32>
    %3 = vector.shape_cast %2 : vector<1x8x256xf32> to vector<8x256xf32>
    %cst = arith.constant dense<0.000000e+00> : vector<16x256xf32>
    %4 = tpu.matmul %0, %3, %cst {dimension_numbers = #tpu.dot_dimension_numbers<[1], [0], [0], [1], [0, 0, 1, 1], [], []>} : vector<16x8xf32>, vector<8x256xf32>, vector<16x256xf32> -> vector<16x256xf32>
    %5 = vector.broadcast %1 : vector<16x1xf32> to vector<16x256xf32>
    %6 = arith.addf %4, %5 : vector<16x256xf32>
    %cst_6 = arith.constant 0.000000e+00 : f32
    %7 = vector.broadcast %cst_6 : f32 to vector<16x256xf32>
    %8 = arith.cmpf oge, %6, %7 : vector<16x256xf32>
    %cst_7 = arith.constant 1.000000e-01 : f32
    %9 = vector.broadcast %cst_7 : f32 to vector<16x256xf32>
    %10 = arith.mulf %9, %6 : vector<16x256xf32>
    %11 = arith.select %8, %6, %10 : vector<16x256xi1>, vector<16x256xf32>
    %c0_8 = arith.constant 0 : index
    %c0_9 = arith.constant 0 : index
    %c0_10 = arith.constant 0 : index
    %12 = vector.load %arg5[%c0_8, %c0_9, %c0_10] : memref<1x16x256xf32, #tpu.memory_space<vmem>>, vector<1x16x256xf32>
    %13 = vector.shape_cast %12 : vector<1x16x256xf32> to vector<16x256xf32>
    %14 = vector.shape_cast %11 : vector<16x256xf32> to vector<1x16x256xf32>
    tpu.vector_store %arg5[%c0_8, %c0_9, %c0_10], %14 {strides = array<i32>} : memref<1x16x256xf32, #tpu.memory_space<vmem>>, vector<1x16x256xf32>,
    return
  }
  func.func @transform_0(%arg0: i32, %arg1: i32) -> (i32, i32, i32) {
    %c0_i32 = arith.constant 0 : i32
    %c0_i32_0 = arith.constant 0 : i32
    return %arg0, %c0_i32, %arg1 : i32, i32, i32
  }
  func.func @transform_1(%arg0: i32, %arg1: i32) -> (i32, i32) {
    %c0_i32 = arith.constant 0 : i32
    %c0_i32_0 = arith.constant 0 : i32
    %c0_i32_1 = arith.constant 0 : i32
    return %c0_i32, %c0_i32_0 : i32, i32
  }
  func.func @transform_2(%arg0: i32, %arg1: i32) -> (i32, i32) {
    %c0_i32 = arith.constant 0 : i32
    %c0_i32_0 = arith.constant 0 : i32
    %c0_i32_1 = arith.constant 0 : i32
    return %c0_i32, %c0_i32_0 : i32, i32
  }
  func.func @transform_3(%arg0: i32, %arg1: i32) -> (i32, i32, i32) {
    %c0_i32 = arith.constant 0 : i32
    %c0_i32_0 = arith.constant 0 : i32
    return %arg0, %c0_i32, %arg1 : i32, i32, i32
  }
}

</mosaic_0001>

<bundles_post_ra>
// kernel: tpu_custom_call.1
= control target key start
LH: loop header
LB: loop body
LE: loop exit
PB: predicated region body
PF: predicated region fallthrough
CT: control target
= control target key end

     0   :  { %8 = vsyncpa [#allocation3], 0  ;;  %s678_s0 = inlined_call_operand.vmem [shape: f32[2,8,256], index: 0, kind: input, shape index: {}]   ;;  %s679_s1 = inlined_call_operand.vmem [shape: f32[16,8], index: 1, kind: input, shape index: {}]   ;;  %s680_s2 = inlined_call_operand.vmem [shape: f32[16,1], index: 2, kind: input, shape index: {}]   ;;  %s681_s3 = inlined_call_operand.hbm [shape: f32[2,16,256], index: 3, kind: output, shape index: {}]  }
   0x1   :  { %10 = vsyncpa [#allocation3 + $0x1], 0  ;;  %s565_s12 = smov 0   ;;  %s567_s13 = smov 0  }
   0x2   :  { %s569_s14 = smov 0   ;;  %s571_s15 = smov 0  }
   0x3   :  { %s573_s16 = smov 0   ;;  %s575_s17 = smov 0  }
   0x4 LB: > { %s382_s18 = sadd.s32 4294967295, %s540_s17   ;;  %s383_s19 = sadd.s32 4294967294, %s540_s17   ;;  %s540_s17 = sphi %s575_s17, %s16_s17   ;;  %s536_s16 = sphi %s573_s16, %s688_s16   ;;  %s532_s15 = sphi %s571_s15, %s687_s15   ;;  %s528_s14 = sphi %s569_s14, %s686_s14   ;;  %s524_s13 = sphi %s567_s13, %s685_s13   ;;  %s520_s12 = sphi %s565_s12, %s684_s12  }
   0x5   : > { %s28_s20 = sadd.s32 1, %s536_s16  ;;  %s107_s21 = sadd.s32 1, %s528_s14 }
   0x6   : > { %p30_p0 = scmp.ge.s32.totalorder %s28_s20, 2  ;;  %p117_p1 = scmp.ne.s32.totalorder %s528_s14, %s524_s13 }
   0x7   : > { %p118_p2 = scmp.eq.s32.totalorder %s382_s18, 1  ;;  %p123_p3 = scmp.ne.s32.totalorder %s524_s13, %s520_s12 }
   0x8   : > { %s690_s20 = smov (%p30_p0, %s28_s20), 0  ;;  %p124_p5 = scmp.eq.s32.totalorder %s383_s19, 1 }
   0x9   : > { %p605_p4 = por %p118_p2, %p117_p1  ;;  %s102_s23 = ssub.s32 %s536_s16, %s690_s20 }
   0xa   : > { %p386_p6 = scmp.ge.s32.totalorder %s540_s17, 1  ;;  %p105_p7 = scmp.eq.s32.totalorder %s102_s23, 0 }
   0xb   : > { %p612_p8 = por %p124_p5, %p123_p3  ;;  %p161_p9 = scmp.lt.s32.totalorder %s540_s17, 3 }
   0xc   : > { %s618_s25 = scalar_select %p105_p7, %s528_s14, %s107_s21  }
   0xd   : > { %p162_p10 = pnand %p386_p6, %p161_p9 }
   0xe   : > { %p190_p11 = scmp.lt.s32.totalorder (!%p162_p10), %s532_s15, 1  ;;  %s186_s18 = sand.u32 (!%p162_p10), 1, %s524_s13  }
   0xf   : > { %165 = sbr.rel (%p162_p10) target bundleno = 169 (0xa9), region = 32  ;;  %s387_s19 = sshll.u32 (!%p162_p10), %s186_s18, 5 }
  0x10   : > { %s400_s21 = sshll.u32 (!%p162_p10), %s532_s15, 5  ;;  %s286_s30 = scalar_lea.sflag (!%p162_p10), [#allocation3], %s186_s18 }
  0x11   : > { %s299_s27 = scalar_lea.hbm (!%p162_p10), %s681_s3, %s400_s21  ;;  %s482_s8 = scalar_lea.hbm (!%p162_p10), %s681_s3, 64 }
  0x14   : > { %v202_v0 = vld [vmem:[%s680_s2] sm:$0xff]  ;;  %v542_v1 = vmov 0   ;;  %s191_s28 = scalar_select %p190_p11, %s532_s15, 1  ;;  %vm216_vm0 = vcmask 64512   ;;  %v201_v5 = vld [vmem:[%s679_s1 + $0x8] sm:$0xff] }
  0x15   : > { %461 = vset.pattern.permute.xlu0 %v542_v1  ;;  %v200_v2 = vld [vmem:[%s679_s1] sm:$0xff]  ;;  %v203_v6 = vld [vmem:[%s680_s2 + $0x8] sm:$0xff]  ;;  %s302_s15 = sshll.u32 %s299_s27, 4  ;;  %s303_s15 = int_to_ptr.hbm [resolvable:$true] %s302_s15 }
  0x16   : > { %208 = vperm.xlu0 %461, %v202_v0   ;;  %s399_s29 = sshll.u32 %s191_s28, 4  ;;  %s188_s28 = scalar_lea.vmem [#allocation2], %s387_s19 }
  0x17   : > { %s197_s5 = scalar_lea.vmem %s678_s0, %s399_s29  ;;  %s300_s29 = sshll.u32 %s188_s28, 4  ;;  %s301_s29 = int_to_ptr.vmem [resolvable:$true] %s300_s29 }
  0x18   : > { %v204_v3 = vld [vmem:[%s197_s5] sm:$0xff]  ;;  %v205_v4 = vld [vmem:[%s197_s5 + $0x8] sm:$0xff]  ;;  %s476_s4 = sshra.s32 %s303_s15, 4  ;;  %s477_s4 = int_to_ptr.hbm [resolvable:$true] %s476_s4 }
  0x19   : > { %238 = vmatpush.msra.mxu0 %v204_v3  ;;  %401 = vmatpush.msra.mxu2 %v204_v3  ;;  %s478_s5 = scalar_lea.hbm %s477_s4, 32  ;;  %p483_p1 = scmp.lt.s32.totalorder %s477_s4, %s681_s3 }
  0x1a   : > { %261 = vmatpush.msra.mxu1 %v205_v4  ;;  %402 = vmatpush.msra.mxu3 %v205_v4  ;;  %p479_p12 = scmp.ne.s32.totalorder %s477_s4, %s478_s5  ;;  %p484_p2 = scmp.lt.s32.totalorder %s482_s8, %s478_s5 }
  0x1b   : > { %390 = vmatmul.msk.f32.vlgmr.msra.gmra.mxu0 %vm216_vm0, %v200_v2  ;;  %391 = vmatmul.msk.f32.vlgmr.msra.gmra.mxu2 %vm216_vm0, %v201_v5 }
  0x1c   : > { %392 = vmatmul.msk.f32.vlgmr.msra.gmra.mxu1 %vm216_vm0, %v200_v2  ;;  %393 = vmatmul.msk.f32.vlgmr.msra.gmra.mxu3 %vm216_vm0, %v201_v5  ;;  %p480_p13 = pnand %p479_p12, %p605_p4  ;;  %p485_p3 = por %p484_p2, %p483_p1 }
  0x1e   : > { %213 = vperm.xlu0 %461, %v203_v6   ;;  %p481_p0 = pneg %p480_p13 }
  0x20   : > { %p486_p5 = pnand %p485_p3, %p481_p0 }
  0x88   : > { %v209_v7 = vpop.permute.xlu0 %208 }
  0x90   : > { %v214_v15 = vpop.permute.xlu0 %213 }
  0x98   : > { %v240_v8 = vpop.f32.mrf.mxu0 }
  0x99   : > { %v241_v9 = vadd.f32 %v240_v8, %v209_v7  ;;  %v263_v10 = vpop.f32.mrf.mxu1 }
  0x9a   : > { %v264_v11 = vadd.f32 %v263_v10, %v209_v7 }
  0x9b   : > { %vm269_vm1 = vcmp.ge.f32.partialorder %v241_v9, 0.0  ;;  %v273_v12 = vmul.f32 0.1, %v241_v9 }
  0x9c   : > { %vm270_vm2 = vcmp.ge.f32.partialorder %v264_v11, 0.0  ;;  %v274_v13 = vmul.f32 0.1, %v264_v11 }
  0x9d   : > { %v277_v14 = vsel %vm269_vm1, %v241_v9, %v273_v12 }
  0x9e   : > { %281 = vst [vmem:[%s188_s28] sm:$0xff] %v277_v14  ;;  %v278_v16 = vsel %vm270_vm2, %v264_v11, %v274_v13  ;;  %v243_v17 = vpop.f32.mrf.mxu2 }
  0x9f   : > { %282 = vst [vmem:[%s188_s28 + $0x8] sm:$0xff] %v278_v16  ;;  %v244_v18 = vadd.f32 %v243_v17, %v214_v15  ;;  %v266_v19 = vpop.f32.mrf.mxu3 }
  0xa0   : > { %v267_v20 = vadd.f32 %v266_v19, %v214_v15 }
  0xa1   : > { %vm271_vm3 = vcmp.ge.f32.partialorder %v244_v18, 0.0  ;;  %v275_v21 = vmul.f32 0.1, %v244_v18 }
  0xa2   : > { %vm272_vm4 = vcmp.ge.f32.partialorder %v267_v20, 0.0  ;;  %v276_v22 = vmul.f32 0.1, %v267_v20 }
  0xa3   : > { %v279_v23 = vsel %vm271_vm3, %v244_v18, %v275_v21 }
  0xa4   : > { %283 = vst [vmem:[%s188_s28 + $0x10] sm:$0xff] %v279_v23  ;;  %v280_v24 = vsel %vm272_vm4, %v267_v20, %v276_v22 }
  0xa5   : > { %284 = vst [vmem:[%s188_s28 + $0x18] sm:$0xff] %v280_v24 }
  0xa6   : > { %489 = shalt.err (!%p486_p5)
}
  0xa7   : > { %s543_s11 = smov 256   ;;  %s544_s18 = smov 16  }
  0xa8   : > { %403 = dma.vmem_to_hbm [thread:$0]  (%p605_p4), %s301_s29, 512, %s303_s15, %s286_s30, %s543_s11, %s543_s11, %s544_s18  }
  0xa9 PF: > { %p409_p6 = scmp.ge.s32.totalorder %s540_s17, 2  ;;  %s317_s19 = sand.u32 1, %s520_s12  }
  0xaa   : > { %s318_s21 = scalar_lea.sflag [#allocation3], %s317_s19 }
  0xab   : > { %p406_p7 = pnand %p409_p6, %p612_p8 }
  0xad   : > { %p407_p9 = pneg %p406_p7 }
  0xaf   : > { %515 = dma.done.wait (%p407_p9), %s318_s21, 512  }
  0xb0   : > { %517 = vsyncadd (%p407_p9), %s318_s21, 4294966784  ;;  %s16_s17 = sadd.s32 1, %s540_s17   ;;  %s684_s12 = smov %s524_s13 }
  0xb1   : > { %p13_p10 = scmp.ge.s32.totalorder %s16_s17, 4   ;;  %s685_s13 = smov %s528_s14 }
  0xb2   : > { %s686_s14 = smov %s618_s25  ;;  %s687_s15 = smov %s536_s16 }
  0xb3   : > { %s688_s16 = smov %s690_s20  ;;  %15 = sbr.rel (!%p13_p10) target bundleno = 4 (0x4), region = 67 }
  0xb8   :  { %324 = vsyncpa [#allocation3], 1 }
  0xb9   :  { %326 = vsyncpa [#allocation3 + $0x1], 1 }

</bundles_post_ra>
